<compile_context>
chip_gen: v7x
topology: tpu7x:2x2x1
jax: 0.10.0
libtpu: 0.0.40
codegen_flags: <defaults>
</compile_context>

<pallas_src>
import jax
import jax.numpy as jnp
from jax.experimental import pallas as pl
from jax.experimental.pallas import tpu as pltpu

LANES = 128      # TPU lane width; all matmul dims padded to this
CONV_OUT = 64    # 32 fovea + 32 peripheral feature columns (ReLU'd)
FEAT = 80        # 32 + 32 + 16 concat width fed to fc[0]
N_OUT = 10       # Q-values


def _round_up(x, m):
    return (x + m - 1) // m * m


def qnetwork_kernel(x_ref, p_ref, out_ref):
    """Fused forward for one (TB, K0) batch tile.

    x_ref  : (TB, K0)   K0 = pad128(Cf*9 + Cp*9 + 2); extra columns are zero.
    p_ref  : (K0 + 2*128 + 8, 128) packed params:
               rows [0, K0)           block-diag stage-1 weight (conv_f|conv_p|loc)
               rows [K0, K0+128)      fc[0] weight (rows 80:128 zero)
               rows [K0+128, K0+256)  fc[2] weight (cols 10:128 zero)
               row  K0+256            stage-1 bias   (cols 80:128 zero)
               row  K0+257            fc[0] bias
               row  K0+258            fc[2] bias     (cols 10:128 zero)
    out_ref: (TB, 128)  columns 10:128 are zero padding.
    """
    k0 = x_ref.shape[1]
    x = x_ref[...]

    w0 = p_ref[0:k0, :]
    w1 = p_ref[k0:k0 + LANES, :]
    w2 = p_ref[k0 + LANES:k0 + 2 * LANES, :]
    boff = k0 + 2 * LANES
    b0 = p_ref[boff + 0:boff + 1, :]
    b1 = p_ref[boff + 1:boff + 2, :]
    b2 = p_ref[boff + 2:boff + 3, :]

    # Stage 1: fovea conv + peripheral conv + loc Linear fused into one matmul.
    # ReLU only on the first 64 (conv) columns; loc features (64:80) untouched.
    z0 = jnp.dot(x, w0, preferred_element_type=jnp.float32) + b0
    col = jax.lax.broadcasted_iota(jnp.int32, z0.shape, 1)
    a0 = jnp.where(col < CONV_OUT, jnp.maximum(z0, 0.0), z0)

    # fc[0] + ReLU
    h = jnp.maximum(jnp.dot(a0, w1, preferred_element_type=jnp.float32) + b1, 0.0)

    # fc[2]
    out_ref[...] = jnp.dot(h, w2, preferred_element_type=jnp.float32) + b2


def init_params(key, c_fovea, c_peripheral):
    """PyTorch-layout parameters (same shapes as the nn.Module)."""
    ks = jax.random.split(key, 10)

    def uni(k, shape, fan_in):
        bound = 1.0 / jnp.sqrt(jnp.float32(fan_in))
        return jax.random.uniform(k, shape, jnp.float32, -bound, bound)

    fin_f, fin_p = c_fovea * 9, c_peripheral * 9
    return {
        "wf": uni(ks[0], (32, c_fovea, 3, 3), fin_f), "bf": uni(ks[5], (32,), fin_f),
        "wp": uni(ks[1], (32, c_peripheral, 3, 3), fin_p), "bp": uni(ks[6], (32,), fin_p),
        "wl": uni(ks[2], (16, 2), 2), "bl": uni(ks[7], (16,), 2),
        "w1": uni(ks[3], (128, 80), 80), "b1": uni(ks[8], (128,), 80),
        "w2": uni(ks[4], (10, 128), 128), "b2": uni(ks[9], (10,), 128),
    }


def pack_params(tp, c_fovea, c_peripheral, dtype=jnp.float32):
    """Pack all weights/biases into one lane-dense (K0+264, 128) buffer.

    (dtype=jnp.bfloat16 halves DMA bytes on v5e/v6e; f32 kept here so the
     numerical check against the f32 reference stays tight.)
    """
    fin_f, fin_p = c_fovea * 9, c_peripheral * 9
    k0_raw = fin_f + fin_p + 2
    k0 = _round_up(k0_raw, LANES)

    w0 = jnp.zeros((k0, LANES), jnp.float32)
    w0 = w0.at[0:fin_f, 0:32].set(tp["wf"].reshape(32, fin_f).T)
    w0 = w0.at[fin_f:fin_f + fin_p, 32:64].set(tp["wp"].reshape(32, fin_p).T)
    w0 = w0.at[fin_f + fin_p:k0_raw, 64:80].set(tp["wl"].T)

    b0 = jnp.zeros((LANES,), jnp.float32)
    b0 = b0.at[0:32].set(tp["bf"]).at[32:64].set(tp["bp"]).at[64:80].set(tp["bl"])

    w1 = jnp.zeros((LANES, LANES), jnp.float32).at[0:FEAT, :].set(tp["w1"].T)
    b1 = tp["b1"]
    w2 = jnp.zeros((LANES, LANES), jnp.float32).at[:, 0:N_OUT].set(tp["w2"].T)
    b2 = jnp.zeros((LANES,), jnp.float32).at[0:N_OUT].set(tp["b2"])

    n_rows = k0 + 2 * LANES + 8  # 3 bias rows, padded to a sublane multiple
    packed = jnp.zeros((n_rows, LANES), jnp.float32)
    packed = packed.at[0:k0, :].set(w0)
    packed = packed.at[k0:k0 + LANES, :].set(w1)
    packed = packed.at[k0 + LANES:k0 + 2 * LANES, :].set(w2)
    packed = packed.at[k0 + 2 * LANES + 0, :].set(b0)
    packed = packed.at[k0 + 2 * LANES + 1, :].set(b1)
    packed = packed.at[k0 + 2 * LANES + 2, :].set(b2)
    return packed.astype(dtype)


def qnetwork_forward(fovea, peripheral, fov_loc, packed, *, tile_b=512):
    """fovea: (B, Cf, 3, 3) NCHW; peripheral: (B, Cp, 3, 3) NCHW; fov_loc: (B, 2)."""
    B = fovea.shape[0]
    # Conv2d(k=3, s=1) on 3x3 input -> 1x1 output: flatten NCHW to (B, C*9).
    x = jnp.concatenate(
        [fovea.reshape(B, -1), peripheral.reshape(B, -1), fov_loc],
        axis=1).astype(jnp.float32)
    k0_raw = x.shape[1]
    k0 = packed.shape[0] - 2 * LANES - 8
    assert _round_up(k0_raw, LANES) == k0, "packed params do not match input channels"
    x = jnp.pad(x, ((0, 0), (0, k0 - k0_raw)))

    # Batch tile: multiple of 8 sublanes; pad the batch to a full tile multiple.
    tb = min(tile_b, _round_up(B, 8))
    b_pad = _round_up(B, tb)
    if b_pad != B:
        x = jnp.pad(x, ((0, b_pad - B), (0, 0)))
    x = x.astype(packed.dtype)

    out = pl.pallas_call(
        qnetwork_kernel,
        out_shape=jax.ShapeDtypeStruct((b_pad, LANES), jnp.float32),
        grid_spec=pltpu.PrefetchScalarGridSpec(
            num_scalar_prefetch=0,
            grid=(b_pad // tb,),
            in_specs=[
                pl.BlockSpec((tb, k0), lambda i: (i, 0)),      # batch-tiled activations
                pl.BlockSpec(packed.shape, lambda i: (0, 0)),  # params stay VMEM-resident
            ],
            out_specs=pl.BlockSpec((tb, LANES), lambda i: (i, 0)),
        ),
        compiler_params=pltpu.CompilerParams(
            dimension_semantics=("parallel",)),  # megacore split on v7x
    )(x, packed)
    return out[:B, :N_OUT]


def qnetwork_reference(fovea, peripheral, fov_loc, tp):
    """Pure-JAX reference mirroring the PyTorch forward (torch-layout params)."""
    B = fovea.shape[0]
    f = jnp.maximum(fovea.reshape(B, -1) @ tp["wf"].reshape(32, -1).T + tp["bf"], 0.0)
    p = jnp.maximum(peripheral.reshape(B, -1) @ tp["wp"].reshape(32, -1).T + tp["bp"], 0.0)
    l = fov_loc @ tp["wl"].T + tp["bl"]
    combined = jnp.concatenate([f, p, l], axis=1)
    h = jnp.maximum(combined @ tp["w1"].T + tp["b1"], 0.0)
    return h @ tp["w2"].T + tp["b2"]


if __name__ == "__main__":
    key = jax.random.PRNGKey(0)
    k_f, k_p, k_l, k_w = jax.random.split(key, 4)

    B, C_FOVEA, C_PERIPH = 2, 4, 4
    # 3x3 spatial is forced by the module: fc expects 32+32+16 -> 1x1 conv output.
    fovea = jax.random.normal(k_f, (B, C_FOVEA, 3, 3), jnp.float32)
    peripheral = jax.random.normal(k_p, (B, C_PERIPH, 3, 3), jnp.float32)
    fov_loc = jax.random.normal(k_l, (B, 2), jnp.float32)

    torch_params = init_params(k_w, C_FOVEA, C_PERIPH)
    packed = pack_params(torch_params, C_FOVEA, C_PERIPH)

    out = qnetwork_forward(fovea, peripheral, fov_loc, packed)
    out = jax.block_until_ready(out)

    ref = qnetwork_reference(fovea, peripheral, fov_loc, torch_params)
    assert out.shape == (B, N_OUT), out.shape
    max_err = jnp.max(jnp.abs(out - ref))
    assert jnp.allclose(out, ref, atol=1e-4, rtol=1e-4), f"max abs err {max_err}"

    print("KERNEL_OK")
</pallas_src>

<mosaic_0001>
module attributes {stable_mosaic.version = 11 : i64} {
  func.func @qnetwork_kernel(%arg0: i32, %arg1: memref<8x128xf32, #tpu.memory_space<vmem>>, %arg2: memref<392x128xf32, #tpu.memory_space<vmem>>, %arg3: memref<8x128xf32, #tpu.memory_space<vmem>>) attributes {dimension_semantics = [#tpu.dimension_semantics<parallel>], iteration_bounds = array<i64: 1>, scalar_prefetch = 0 : i64, scratch_operands = 0 : i64, tpu.core_type = #tpu.core_type<tc>, window_params = [{transform_indices = @transform_0, window_bounds = array<i64: 8, 128>}, {pipeline_mode = #tpu.pipeline_mode<synchronous>, transform_indices = @transform_1, window_bounds = array<i64: 392, 128>}, {transform_indices = @transform_2, window_bounds = array<i64: 8, 128>}]} {
    %c0 = arith.constant 0 : index
    %c0_0 = arith.constant 0 : index
    %0 = vector.load %arg1[%c0, %c0_0] : memref<8x128xf32, #tpu.memory_space<vmem>>, vector<8x128xf32>
    %c0_1 = arith.constant 0 : index
    %c0_2 = arith.constant 0 : index
    %1 = vector.load %arg2[%c0_1, %c0_2] : memref<392x128xf32, #tpu.memory_space<vmem>>, vector<128x128xf32>
    %c128 = arith.constant 128 : index
    %c0_3 = arith.constant 0 : index
    %2 = vector.load %arg2[%c128, %c0_3] : memref<392x128xf32, #tpu.memory_space<vmem>>, vector<128x128xf32>
    %c256 = arith.constant 256 : index
    %c0_4 = arith.constant 0 : index
    %3 = vector.load %arg2[%c256, %c0_4] : memref<392x128xf32, #tpu.memory_space<vmem>>, vector<128x128xf32>
    %c384 = arith.constant 384 : index
    %c0_5 = arith.constant 0 : index
    %4 = vector.load %arg2[%c384, %c0_5] : memref<392x128xf32, #tpu.memory_space<vmem>>, vector<1x128xf32>
    %c385 = arith.constant 385 : index
    %c0_6 = arith.constant 0 : index
    %5 = vector.load %arg2[%c385, %c0_6] : memref<392x128xf32, #tpu.memory_space<vmem>>, vector<1x128xf32>
    %c386 = arith.constant 386 : index
    %c0_7 = arith.constant 0 : index
    %6 = vector.load %arg2[%c386, %c0_7] : memref<392x128xf32, #tpu.memory_space<vmem>>, vector<1x128xf32>
    %cst = arith.constant dense<0.000000e+00> : vector<8x128xf32>
    %7 = tpu.matmul %0, %1, %cst {dimension_numbers = #tpu.dot_dimension_numbers<[1], [0], [0], [1], [0, 0, 1, 1], [], []>} : vector<8x128xf32>, vector<128x128xf32>, vector<8x128xf32> -> vector<8x128xf32>
    %8 = vector.broadcast %4 : vector<1x128xf32> to vector<8x128xf32>
    %9 = arith.addf %7, %8 : vector<8x128xf32>
    %10 = tpu.iota {dimensions = array<i32: 1>} : vector<8x128xi32>
    %c64_i32 = arith.constant 64 : i32
    %11 = vector.broadcast %c64_i32 : i32 to vector<8x128xi32>
    %12 = arith.cmpi slt, %10, %11 : vector<8x128xi32>
    %cst_8 = arith.constant 0.000000e+00 : f32
    %13 = vector.broadcast %cst_8 : f32 to vector<8x128xf32>
    %14 = arith.maximumf %9, %13 : vector<8x128xf32>
    %15 = arith.select %12, %14, %9 : vector<8x128xi1>, vector<8x128xf32>
    %cst_9 = arith.constant dense<0.000000e+00> : vector<8x128xf32>
    %16 = tpu.matmul %15, %2, %cst_9 {dimension_numbers = #tpu.dot_dimension_numbers<[1], [0], [0], [1], [0, 0, 1, 1], [], []>} : vector<8x128xf32>, vector<128x128xf32>, vector<8x128xf32> -> vector<8x128xf32>
    %17 = vector.broadcast %5 : vector<1x128xf32> to vector<8x128xf32>
    %18 = arith.addf %16, %17 : vector<8x128xf32>
    %cst_10 = arith.constant 0.000000e+00 : f32
    %19 = vector.broadcast %cst_10 : f32 to vector<8x128xf32>
    %20 = arith.maximumf %18, %19 : vector<8x128xf32>
    %cst_11 = arith.constant dense<0.000000e+00> : vector<8x128xf32>
    %21 = tpu.matmul %20, %3, %cst_11 {dimension_numbers = #tpu.dot_dimension_numbers<[1], [0], [0], [1], [0, 0, 1, 1], [], []>} : vector<8x128xf32>, vector<128x128xf32>, vector<8x128xf32> -> vector<8x128xf32>
    %22 = vector.broadcast %6 : vector<1x128xf32> to vector<8x128xf32>
    %23 = arith.addf %21, %22 : vector<8x128xf32>
    %c0_12 = arith.constant 0 : index
    %c0_13 = arith.constant 0 : index
    %24 = vector.load %arg3[%c0_12, %c0_13] : memref<8x128xf32, #tpu.memory_space<vmem>>, vector<8x128xf32>
    tpu.vector_store %arg3[%c0_12, %c0_13], %23 {strides = array<i32>} : memref<8x128xf32, #tpu.memory_space<vmem>>, vector<8x128xf32>,
    return
  }
  func.func @transform_0(%arg0: i32) -> (i32, i32) {
    %c0_i32 = arith.constant 0 : i32
    %c0_i32_0 = arith.constant 0 : i32
    return %arg0, %c0_i32 : i32, i32
  }
  func.func @transform_1(%arg0: i32) -> (i32, i32) {
    %c0_i32 = arith.constant 0 : i32
    %c0_i32_0 = arith.constant 0 : i32
    %c0_i32_1 = arith.constant 0 : i32
    return %c0_i32, %c0_i32_0 : i32, i32
  }
  func.func @transform_2(%arg0: i32) -> (i32, i32) {
    %c0_i32 = arith.constant 0 : i32
    %c0_i32_0 = arith.constant 0 : i32
    return %arg0, %c0_i32 : i32, i32
  }
}

</mosaic_0001>

<bundles_post_ra>
// kernel: tpu_custom_call.1
= control target key start
LH: loop header
LB: loop body
LE: loop exit
PB: predicated region body
PF: predicated region fallthrough
CT: control target
= control target key end

     0   :  { %7 = vsyncpa [#allocation3], 0  ;;  %s742_s0 = inlined_call_operand.hbm [shape: f32[8,128], index: 0, kind: input, shape index: {}]   ;;  %s743_s1 = inlined_call_operand.hbm [shape: f32[392,128], index: 1, kind: input, shape index: {}]   ;;  %s744_s2 = inlined_call_operand.hbm [shape: f32[8,128], index: 2, kind: output, shape index: {}]  }
   0x1   :  { %8 = vsyncpa [#allocation6], 0 }
   0x2   :  { %9 = vsyncpa [#allocation4], 0  ;;  %s646_s9 = smov [#allocation2]   ;;  %s647_s11 = smov [#allocation5]  }
   0x3   :  { %s16_s10 = sshll.u32 %s646_s9, 4  ;;  %s25_s12 = sshll.u32 %s647_s11, 4  ;;  %s17_s10 = int_to_ptr.vmem [resolvable:$true] %s16_s10  ;;  %s669_s12 = int_to_ptr.vmem [resolvable:$true] %s25_s12 }
   0x4   :  { %s574_s15 = scalar_lea.hbm %s742_s0, 128 }
   0x5   :  { %p575_p0 = scmp.ne.s32.totalorder %s742_s0, %s574_s15  ;;  %p578_p1 = scmp.lt.u32.totalorder %s574_s15, %s742_s0 }
   0x7   :  { %p580_p2 = pnand %p578_p1, %p575_p0 }
   0x9   :  { %583 = shalt.err (!%p580_p2)
}
   0xa   :  { %s584_s20 = scalar_lea.vmem %s17_s10, 128  ;;  %p589_p4 = scmp.lt.s32.totalorder %s17_s10, %s17_s10 }
   0xb   :  { %p585_p3 = scmp.ne.s32.totalorder %s17_s10, %s584_s20  ;;  %p590_p5 = scmp.lt.s32.totalorder %s584_s20, %s584_s20 }
   0xd   :  { %p591_p6 = por %p590_p5, %p589_p4 }
   0xf   :  { %p592_p7 = pnand %p591_p6, %p585_p3 }
  0x11   :  { %595 = shalt.err (!%p592_p7)
}
  0x12   :  { %19 = dma.hbm_to_vmem [thread:$0]  %s742_s0, 128, %s17_s10, [#allocation3]  }
  0x13   :  { %s596_s25 = scalar_lea.hbm %s743_s1, 6272 }
  0x14   :  { %p597_p8 = scmp.ne.s32.totalorder %s743_s1, %s596_s25  ;;  %p600_p9 = scmp.lt.u32.totalorder %s596_s25, %s743_s1 }
  0x16   :  { %p602_p10 = pnand %p600_p9, %p597_p8 }
  0x18   :  { %605 = shalt.err (!%p602_p10)
}
  0x19   :  { %s606_s30 = scalar_lea.vmem %s669_s12, 6272  ;;  %p611_p12 = scmp.lt.s32.totalorder %s669_s12, %s669_s12 }
  0x1a   :  { %p607_p11 = scmp.ne.s32.totalorder %s669_s12, %s606_s30  ;;  %p612_p13 = scmp.lt.s32.totalorder %s606_s30, %s606_s30 }
  0x1c   :  { %p613_p0 = por %p612_p13, %p611_p12 }
  0x1e   :  { %p614_p1 = pnand %p613_p0, %p607_p11 }
  0x20   :  { %617 = shalt.err (!%p614_p1)
}
  0x21   :  { %s648_s0 = smov 128   ;;  %s649_s3 = smov 8  }
  0x22   :  { %31 = dma.hbm_to_vmem [thread:$0]  %s743_s1, 6272, %s669_s12, [#allocation6], %s648_s0, %s648_s0, %s649_s3  }
  0x23   :  { %640 = dma.done.wait [#allocation3], 128  }
  0x24   :  { %641 = vsyncadd [#allocation3], 4294967168 }
  0x25   :  { %642 = dma.done.wait [#allocation6], 6272  }
  0x26   :  { %643 = vsyncadd [#allocation6], 4294961024  ;;  %v650_v0 = vmov 0.0|0.0   ;;  %vm651_vm0 = vmmov 0   ;;  %v652_v1 = vmov 0.0   ;;  %v39_v2 = vld [vmem:[#allocation5] sm:$0xff] }
  0x27   :  { %494 = vmatprep.subr.bf16.mxu0 %v650_v0  ;;  %421 = vmatprep.mubr.msk.f32.mxu0 %vm651_vm0, %v652_v1  ;;  %v40_v3 = vld [vmem:[#allocation5 + $0x8] sm:$0xff]  ;;  %v41_v4 = vld [vmem:[#allocation5 + $0x10] sm:$0xff]  ;;  %v42_v6 = vld [vmem:[#allocation5 + $0x18] sm:$0xff]  ;;  %s653_s1 = smov [#allocation7]  }
  0x28   :  { %518 = vmatprep.subr.bf16.mxu1 %v650_v0  ;;  %456 = vmatprep.mubr.msk.f32.mxu1 %vm651_vm0, %v652_v1  ;;  %v495_v5 = vpack.c.bf16 %v40_v3, %v39_v2  ;;  %v498_v7 = vpack.c.bf16 %v42_v6, %v41_v4  ;;  %v43_v8 = vld [vmem:[#allocation5 + $0x20] sm:$0xff]  ;;  %v44_v9 = vld [vmem:[#allocation5 + $0x28] sm:$0xff]  ;;  %v57_v12 = vld [vmem:[#allocation5 + $0x90] sm:$0xff]  ;;  %s325_s6 = sshll.u32 %s653_s1, 4  ;;  %s326_s6 = int_to_ptr.vmem [resolvable:$true] %s325_s6 }
  0x29   :  { %v55_v10 = vld [vmem:[#allocation5 + $0x80] sm:$0xff]  ;;  %v56_v11 = vld [vmem:[#allocation5 + $0x88] sm:$0xff]  ;;  %v58_v13 = vld [vmem:[#allocation5 + $0x98] sm:$0xff]  ;;  %v501_v14 = vpack.c.bf16 %v44_v9, %v43_v8  ;;  %v164_v9 = vlaneseq  ;;  %s618_s7 = scalar_lea.vmem %s326_s6, 128  ;;  %p623_p3 = scmp.lt.s32.totalorder %s326_s6, %s326_s6 }
  0x2a   :  { %496 = vmatpush3.bf16.msra.mxu0 %v495_v5  ;;  %v519_v15 = vpack.c.bf16 %v56_v11, %v55_v10  ;;  %v45_v16 = vld [vmem:[#allocation5 + $0x30] sm:$0xff]  ;;  %v46_v17 = vld [vmem:[#allocation5 + $0x38] sm:$0xff]  ;;  %v522_v18 = vpack.c.bf16 %v58_v13, %v57_v12  ;;  %v59_v19 = vld [vmem:[#allocation5 + $0xa0] sm:$0xff]  ;;  %p619_p2 = scmp.ne.s32.totalorder %s326_s6, %s618_s7  ;;  %p624_p4 = scmp.lt.s32.totalorder %s618_s7, %s618_s7 }
  0x2b   :  { %497 = vmatprep.subr.bf16.mxu0 %v650_v0  ;;  %v60_v20 = vld [vmem:[#allocation5 + $0xa8] sm:$0xff]  ;;  %v504_v21 = vpack.c.bf16 %v46_v17, %v45_v16  ;;  %v47_v22 = vld [vmem:[#allocation5 + $0x40] sm:$0xff]  ;;  %v61_v25 = vld [vmem:[#allocation5 + $0xb0] sm:$0xff]  ;;  %v165_v11 = vand.u32 127, %v164_v9 }
  0x2c   :  { %520 = vmatpush3.bf16.msra.mxu1 %v519_v15  ;;  %v48_v23 = vld [vmem:[#allocation5 + $0x48] sm:$0xff]  ;;  %v525_v24 = vpack.c.bf16 %v60_v20, %v59_v19  ;;  %v62_v26 = vld [vmem:[#allocation5 + $0xb8] sm:$0xff]  ;;  %v49_v28 = vld [vmem:[#allocation5 + $0x50] sm:$0xff]  ;;  %p625_p5 = por %p624_p4, %p623_p3 }
  0x2d   :  { %521 = vmatprep.subr.bf16.mxu1 %v650_v0  ;;  %v507_v27 = vpack.c.bf16 %v48_v23, %v47_v22  ;;  %v50_v29 = vld [vmem:[#allocation5 + $0x58] sm:$0xff]  ;;  %v528_v30 = vpack.c.bf16 %v62_v26, %v61_v25  ;;  %v63_v31 = vld [vmem:[#allocation5 + $0xc0] sm:$0xff]  ;;  %v64_v32 = vld [vmem:[#allocation5 + $0xc8] sm:$0xff]  ;;  %vm166_vm1 = vcmp.lt.s32.totalorder %v165_v11, 64 }
  0x2e   :  { %499 = vmatpush3.bf16.msra.mxu0 %v498_v7  ;;  %v510_v33 = vpack.c.bf16 %v50_v29, %v49_v28  ;;  %v51_v34 = vld [vmem:[#allocation5 + $0x60] sm:$0xff]  ;;  %v52_v35 = vld [vmem:[#allocation5 + $0x68] sm:$0xff]  ;;  %v531_v36 = vpack.c.bf16 %v64_v32, %v63_v31  ;;  %v65_v37 = vld [vmem:[#allocation5 + $0xd0] sm:$0xff]  ;;  %p626_p6 = pnand %p625_p5, %p619_p2 }
  0x2f   :  { %500 = vmatprep.subr.bf16.mxu0 %v650_v0  ;;  %v66_v38 = vld [vmem:[#allocation5 + $0xd8] sm:$0xff]  ;;  %v513_v39 = vpack.c.bf16 %v52_v35, %v51_v34  ;;  %v53_v40 = vld [vmem:[#allocation5 + $0x70] sm:$0xff]  ;;  %v67_v43 = vld [vmem:[#allocation5 + $0xe0] sm:$0xff] }
  0x30   :  { %523 = vmatpush3.bf16.msra.mxu1 %v522_v18  ;;  %v54_v41 = vld [vmem:[#allocation5 + $0x78] sm:$0xff]  ;;  %v534_v42 = vpack.c.bf16 %v66_v38, %v65_v37  ;;  %v68_v44 = vld [vmem:[#allocation5 + $0xe8] sm:$0xff]  ;;  %v69_v48 = vld [vmem:[#allocation5 + $0xf0] sm:$0xff] }
  0x31   :  { %524 = vmatprep.subr.bf16.mxu1 %v650_v0  ;;  %v516_v45 = vpack.c.bf16 %v54_v41, %v53_v40  ;;  %v537_v46 = vpack.c.bf16 %v68_v44, %v67_v43  ;;  %v38_v47 = vld [vmem:[#allocation2] sm:$0xff]  ;;  %v71_v51 = vld [vmem:[#allocation5 + $0x100] sm:$0xff]  ;;  %v72_v52 = vld [vmem:[#allocation5 + $0x108] sm:$0xff] }
  0x32   :  { %502 = vmatpush3.bf16.msra.mxu0 %v501_v14  ;;  %v70_v49 = vld [vmem:[#allocation5 + $0xf8] sm:$0xff]  ;;  %v73_v53 = vld [vmem:[#allocation5 + $0x110] sm:$0xff]  ;;  %v543_v54 = vpack.c.bf16 %v72_v52, %v71_v51  ;;  %v75_v57 = vld [vmem:[#allocation5 + $0x120] sm:$0xff] }
  0x33   :  { %503 = vmatprep.subr.bf16.mxu0 %v650_v0  ;;  %v540_v50 = vpack.c.bf16 %v70_v49, %v69_v48  ;;  %v74_v55 = vld [vmem:[#allocation5 + $0x118] sm:$0xff]  ;;  %v76_v58 = vld [vmem:[#allocation5 + $0x128] sm:$0xff]  ;;  %v77_v60 = vld [vmem:[#allocation5 + $0x130] sm:$0xff] }
  0x34   :  { %526 = vmatpush3.bf16.msra.mxu1 %v525_v24  ;;  %v546_v56 = vpack.c.bf16 %v74_v55, %v73_v53  ;;  %v549_v59 = vpack.c.bf16 %v76_v58, %v75_v57  ;;  %v78_v61 = vld [vmem:[#allocation5 + $0x138] sm:$0xff]  ;;  %v79_v63 = vld [vmem:[#allocation5 + $0x140] sm:$0xff]  ;;  %v81_v3 = vld [vmem:[#allocation5 + $0x150] sm:$0xff] }
  0x35   :  { %527 = vmatprep.subr.bf16.mxu1 %v650_v0  ;;  %v552_v62 = vpack.c.bf16 %v78_v61, %v77_v60  ;;  %v82_v4 = vld [vmem:[#allocation5 + $0x158] sm:$0xff]  ;;  %v83_v6 = vld [vmem:[#allocation5 + $0x160] sm:$0xff]  ;;  %v84_v7 = vld [vmem:[#allocation5 + $0x168] sm:$0xff] }
  0x36   :  { %505 = vmatpush3.bf16.msra.mxu0 %v504_v21  ;;  %v558_v5 = vpack.c.bf16 %v82_v4, %v81_v3  ;;  %v561_v8 = vpack.c.bf16 %v84_v7, %v83_v6  ;;  %v335_v10 = vld [vmem:[#allocation5 + $0x180] ss:$0 sm:$0xff]  ;;  %v85_v17 = vld [vmem:[#allocation5 + $0x170] sm:$0xff]  ;;  %v86_v18 = vld [vmem:[#allocation5 + $0x178] sm:$0xff] }
  0x37   :  { %506 = vmatprep.subr.bf16.mxu0 %v650_v0  ;;  %v564_v19 = vpack.c.bf16 %v86_v18, %v85_v17  ;;  %v336_v20 = vld [vmem:[#allocation5 + $0x181] ss:$0 sm:$0xff] }
  0x38   :  { %529 = vmatpush3.bf16.msra.mxu1 %v528_v30 }
  0x39   :  { %530 = vmatprep.subr.bf16.mxu1 %v650_v0 }
  0x3a   :  { %508 = vmatpush3.bf16.msra.mxu0 %v507_v27 }
  0x3b   :  { %509 = vmatprep.subr.bf16.mxu0 %v650_v0 }
  0x3c   :  { %532 = vmatpush3.bf16.msra.mxu1 %v531_v36 }
  0x3d   :  { %533 = vmatprep.subr.bf16.mxu1 %v650_v0 }
  0x3e   :  { %511 = vmatpush3.bf16.msra.mxu0 %v510_v33 }
  0x3f   :  { %512 = vmatprep.subr.bf16.mxu0 %v650_v0 }
  0x40   :  { %535 = vmatpush3.bf16.msra.mxu1 %v534_v42 }
  0x41   :  { %536 = vmatprep.subr.bf16.mxu1 %v650_v0 }
  0x42   :  { %514 = vmatpush3.bf16.msra.mxu0 %v513_v39 }
  0x43   :  { %515 = vmatprep.subr.bf16.mxu0 %v650_v0 }
  0x44   :  { %538 = vmatpush3.bf16.msra.mxu1 %v537_v46 }
  0x45   :  { %539 = vmatprep.subr.bf16.mxu1 %v650_v0 }
  0x46   :  { %517 = vmatpush3.bf16.msra.mxu0 %v516_v45 }
  0x47   :  { %542 = vmatprep.subr.bf16.mxu0 %v650_v0 }
  0x48   :  { %541 = vmatpush3.bf16.msra.mxu1 %v540_v50 }
  0x49   :  { %422 = vmatmul.mubr.f32.vlgmr.msra.gmra.mrb[0].mxu0 %v38_v47 }
  0x4a   :  { %491 = vmatprep.mubr.msk.f32.mxu0 %vm651_vm0, %v652_v1  ;;  %544 = vmatpush3.bf16.msra.mxu0 %v543_v54  ;;  %v80_v1 = vld [vmem:[#allocation5 + $0x148] sm:$0xff] }
  0x4b   :  { %545 = vmatprep.subr.bf16.mxu0 %v650_v0  ;;  %v555_v2 = vpack.c.bf16 %v80_v1, %v79_v63 }
  0x4e   :  { %547 = vmatpush3.bf16.msra.mxu0 %v546_v56 }
  0x4f   :  { %548 = vmatprep.subr.bf16.mxu0 %v650_v0 }
  0x52   :  { %550 = vmatpush3.bf16.msra.mxu0 %v549_v59 }
  0x53   :  { %551 = vmatprep.subr.bf16.mxu0 %v650_v0 }
  0x56   :  { %553 = vmatpush3.bf16.msra.mxu0 %v552_v62 }
  0x57   :  { %554 = vmatprep.subr.bf16.mxu0 %v650_v0 }
  0x5a   :  { %556 = vmatpush3.bf16.msra.mxu0 %v555_v2 }
  0x5b   :  { %557 = vmatprep.subr.bf16.mxu0 %v650_v0 }
  0x5e   :  { %559 = vmatpush3.bf16.msra.mxu0 %v558_v5 }
  0x5f   :  { %560 = vmatprep.subr.bf16.mxu0 %v650_v0 }
  0x62   :  { %562 = vmatpush3.bf16.msra.mxu0 %v561_v8 }
  0x63   :  { %563 = vmatprep.subr.bf16.mxu0 %v650_v0  ;;  %v337_v0 = vld [vmem:[#allocation5 + $0x182] ss:$0 sm:$0xff] }
  0x66   :  { %565 = vmatpush3.bf16.msra.mxu0 %v564_v19 }
 0x11c   :  { %v160_v12 = vpop.f32.mrb[0].mxu0 }
 0x11d   :  { %v161_v13 = vadd.f32 %v335_v10, %v160_v12  ;;  %v423_v14 = vpop.f32.mrb[1].mxu0 }
 0x11f   :  { %v167_v15 = vmax.f32 %v161_v13, 0.0 }
 0x121   :  { %v168_v16 = vsel %vm166_vm1, %v167_v15, %v161_v13 }
 0x122   :  { %457 = vmatmul.mubr.f32.vlgmr.msra.gmra.mrb[0].mxu1 %v168_v16 }
 0x1f5   :  { %v239_v21 = vpop.f32.mrb[0].mxu1 }
 0x1f6   :  { %v240_v22 = vadd.f32 %v336_v20, %v239_v21  ;;  %v458_v23 = vpop.f32.mrb[1].mxu1 }
 0x1f8   :  { %v243_v24 = vmax.f32 %v240_v22, 0.0 }
 0x1fa   :  { %492 = vmatmul.mubr.f32.vlgmr.msra.gmra.mrb[2].mxu0 %v243_v24 }
 0x2cd   :  { %v314_v25 = vpop.f32.mrb[2].mxu0 }
 0x2ce   :  { %v315_v26 = vadd.f32 %v337_v0, %v314_v25  ;;  %v493_v27 = vpop.f32.mrb[3].mxu0 }
 0x2d0   :  { %318 = vst [vmem:[#allocation7] sm:$0xff] %v315_v26 }
 0x2d1   :  { %629 = shalt.err (!%p626_p6)
}
 0x2d2   :  { %s630_s10 = scalar_lea.hbm %s744_s2, 128 }
 0x2d3   :  { %p631_p7 = scmp.ne.s32.totalorder %s744_s2, %s630_s10  ;;  %p634_p8 = scmp.lt.u32.totalorder %s630_s10, %s744_s2 }
 0x2d5   :  { %p636_p9 = pnand %p634_p8, %p631_p7 }
 0x2d7   :  { %639 = shalt.err (!%p636_p9)
}
 0x2d8   :  { %328 = dma.vmem_to_hbm [thread:$0]  %s326_s6, 128, %s744_s2, [#allocation4]  }
 0x2d9   :  { %644 = dma.done.wait [#allocation4], 128  }
 0x2da   :  { %645 = vsyncadd [#allocation4], 4294967168 }
 0x2db   :  { %332 = vsyncpa [#allocation3], 1 }
 0x2dc   :  { %333 = vsyncpa [#allocation6], 1 }
 0x2dd   :  { %334 = vsyncpa [#allocation4], 1 }

</bundles_post_ra>
